<compile_context>
chip_gen: v7x
topology: tpu7x:2x2x1
jax: 0.10.0
libtpu: 0.0.40
codegen_flags: <defaults>
</compile_context>

<pallas_src>
import jax
import jax.numpy as jnp
from jax.experimental import pallas as pl
from jax.experimental.pallas import tpu as pltpu


def rope_kernel(x_ref, c_ref, se_ref, so_ref, o_ref):
    # x_ref: (1, TS, H*D) in the original interleaved head_dim layout.
    # c/se/so: (TS, H*D) interleaved, sign/zero-masked cos/sin caches (f32).
    x = x_ref[...].astype(jnp.float32)            # (1, TS, HD)
    c = c_ref[...][None]                          # (1, TS, HD)
    se = se_ref[...][None]
    so = so_ref[...][None]

    # Lane-neighbor exchange in VMEM: xl[j] = x[j+1], xr[j] = x[j-1].
    # The wrapped lanes (xl at j=HD-1, xr at j=0) and any cross-pair / cross-head
    # leakage are multiplied by the zero entries of se/so, so they never contribute.
    xl = jnp.concatenate([x[..., 1:], x[..., :1]], axis=-1)
    xr = jnp.concatenate([x[..., -1:], x[..., :-1]], axis=-1)

    # out[2i]   = x[2i]  *cos - x[2i+1]*sin
    # out[2i+1] = x[2i+1]*cos + x[2i]  *sin
    o_ref[...] = (x * c + xl * se + xr * so).astype(o_ref.dtype)


def make_rope_cache(dim: int, max_seq_len: int, base: int) -> jnp.ndarray:
    """Deterministic buffer, identical to the PyTorch __init__ cache."""
    theta = 1.0 / (base ** (jnp.arange(0, dim, 2, dtype=jnp.float32) / dim))
    seq_idx = jnp.arange(max_seq_len, dtype=jnp.float32)
    freqs = seq_idx[:, None] * theta[None, :]                # (L, dim//2)
    return jnp.stack([jnp.cos(freqs), jnp.sin(freqs)], -1)   # (L, dim//2, 2)


def make_interleaved_caches(cache: jnp.ndarray, seq_len: int, n_heads: int):
    """Interleaved, sign/zero-masked, head-tiled caches of shape (S, H*D), f32."""
    cos = cache[:seq_len, :, 0]                   # (S, D/2)
    sin = cache[:seq_len, :, 1]
    s, d2 = cos.shape
    zeros = jnp.zeros_like(sin)
    c = jnp.stack([cos, cos], axis=-1).reshape(s, 2 * d2)
    se = jnp.stack([-sin, zeros], axis=-1).reshape(s, 2 * d2)
    so = jnp.stack([zeros, sin], axis=-1).reshape(s, 2 * d2)
    if n_heads > 1:
        c = jnp.tile(c, (1, n_heads))
        se = jnp.tile(se, (1, n_heads))
        so = jnp.tile(so, (1, n_heads))
    return c, se, so


def _pick_seq_tile(s: int, hd: int, itemsize: int,
                   target_bytes: int = 2 << 20) -> int:
    """Seq tile: full S if it fits the budget, else the largest multiple-of-8
    divisor of S whose (1, ts, hd) x-block is <= target_bytes."""
    cap = max(1, target_bytes // (hd * itemsize))
    if s <= cap:
        return s
    best = None
    t = 8
    while t <= cap:
        if s % t == 0:
            best = t
        t += 8
    return best if best is not None else s


def rope_pallas(x: jnp.ndarray, cache: jnp.ndarray) -> jnp.ndarray:
    b, s, h, d = x.shape
    assert d % 2 == 0, "head_dim must be even"
    assert s <= cache.shape[0], "seq_len exceeds cache max_seq_len"
    hd = h * d

    # Free, contiguous reshape: lane axis becomes H*D (lane-dense blocks).
    x3 = x.reshape(b, s, hd)
    c, se, so = make_interleaved_caches(cache, s, h)

    ts = _pick_seq_tile(s, hd, jnp.dtype(x.dtype).itemsize)
    # Batch innermost: cache blocks (indexed only by the seq-tile axis) are not
    # re-fetched across the inner batch loop.
    grid = (s // ts, b)

    x_spec = pl.BlockSpec((1, ts, hd), lambda j, i: (i, j, 0))
    cache_spec = pl.BlockSpec((ts, hd), lambda j, i: (j, 0))

    out3 = pl.pallas_call(
        rope_kernel,
        out_shape=jax.ShapeDtypeStruct((b, s, hd), x.dtype),
        grid_spec=pltpu.PrefetchScalarGridSpec(
            num_scalar_prefetch=0,
            grid=grid,
            in_specs=[x_spec, cache_spec, cache_spec, cache_spec],
            out_specs=x_spec,
        ),
        compiler_params=pltpu.CompilerParams(
            dimension_semantics=("parallel", "parallel"),
        ),
    )(x3, c, se, so)
    return out3.reshape(b, s, h, d)


def rope_reference(x: jnp.ndarray, cache: jnp.ndarray) -> jnp.ndarray:
    """Pure-JAX replica of the PyTorch forward, for verification."""
    b, s, h, d = x.shape
    rc = cache[:s].reshape(1, s, 1, d // 2, 2)
    xs = x.astype(jnp.float32).reshape(b, s, h, d // 2, 2)
    out = jnp.stack(
        [
            xs[..., 0] * rc[..., 0] - xs[..., 1] * rc[..., 1],
            xs[..., 1] * rc[..., 0] + xs[..., 0] * rc[..., 1],
        ],
        axis=-1,
    )
    return out.reshape(b, s, h, d).astype(x.dtype)


if __name__ == "__main__":
    dim = 32          # head_dim
    max_seq_len = 16
    base = 10000
    batch, seq, n_heads = 2, 8, 4

    key = jax.random.PRNGKey(0)
    x = jax.random.normal(key, (batch, seq, n_heads, dim), dtype=jnp.float32)

    cache = make_rope_cache(dim, max_seq_len, base)

    out = jax.block_until_ready(rope_pallas(x, cache))

    ref = rope_reference(x, cache)
    assert out.shape == x.shape and out.dtype == x.dtype
    assert jnp.allclose(out, ref, atol=1e-5, rtol=1e-5)

    print("KERNEL_OK")
</pallas_src>

<mosaic_0001>
module attributes {stable_mosaic.version = 11 : i64} {
  func.func @rope_kernel(%arg0: i32, %arg1: i32, %arg2: memref<1x8x128xf32, #tpu.memory_space<vmem>>, %arg3: memref<8x128xf32, #tpu.memory_space<vmem>>, %arg4: memref<8x128xf32, #tpu.memory_space<vmem>>, %arg5: memref<8x128xf32, #tpu.memory_space<vmem>>, %arg6: memref<1x8x128xf32, #tpu.memory_space<vmem>>) attributes {dimension_semantics = [#tpu.dimension_semantics<parallel>, #tpu.dimension_semantics<parallel>], iteration_bounds = array<i64: 1, 2>, scalar_prefetch = 0 : i64, scratch_operands = 0 : i64, tpu.core_type = #tpu.core_type<tc>, window_params = [{transform_indices = @transform_0, window_bounds = array<i64: 1, 8, 128>}, {transform_indices = @transform_1, window_bounds = array<i64: 8, 128>}, {transform_indices = @transform_2, window_bounds = array<i64: 8, 128>}, {transform_indices = @transform_3, window_bounds = array<i64: 8, 128>}, {transform_indices = @transform_4, window_bounds = array<i64: 1, 8, 128>}]} {
    %c0 = arith.constant 0 : index
    %c0_0 = arith.constant 0 : index
    %c0_1 = arith.constant 0 : index
    %0 = vector.load %arg2[%c0, %c0_0, %c0_1] : memref<1x8x128xf32, #tpu.memory_space<vmem>>, vector<1x8x128xf32>
    %c0_2 = arith.constant 0 : index
    %c0_3 = arith.constant 0 : index
    %1 = vector.load %arg3[%c0_2, %c0_3] : memref<8x128xf32, #tpu.memory_space<vmem>>, vector<8x128xf32>
    %2 = vector.shape_cast %1 : vector<8x128xf32> to vector<1x8x128xf32>
    %c0_4 = arith.constant 0 : index
    %c0_5 = arith.constant 0 : index
    %3 = vector.load %arg4[%c0_4, %c0_5] : memref<8x128xf32, #tpu.memory_space<vmem>>, vector<8x128xf32>
    %4 = vector.shape_cast %3 : vector<8x128xf32> to vector<1x8x128xf32>
    %c0_6 = arith.constant 0 : index
    %c0_7 = arith.constant 0 : index
    %5 = vector.load %arg5[%c0_6, %c0_7] : memref<8x128xf32, #tpu.memory_space<vmem>>, vector<8x128xf32>
    %6 = vector.shape_cast %5 : vector<8x128xf32> to vector<1x8x128xf32>
    %7 = vector.extract_strided_slice %0 {offsets = [0, 0, 1], sizes = [1, 8, 127], strides = [1, 1, 1]} : vector<1x8x128xf32> to vector<1x8x127xf32>
    %8 = vector.extract_strided_slice %0 {offsets = [0, 0, 0], sizes = [1, 8, 1], strides = [1, 1, 1]} : vector<1x8x128xf32> to vector<1x8x1xf32>
    %9 = tpu.concatenate %7, %8 in 2 : vector<1x8x127xf32>, vector<1x8x1xf32> -> vector<1x8x128xf32>
    %10 = vector.extract_strided_slice %0 {offsets = [0, 0, 127], sizes = [1, 8, 1], strides = [1, 1, 1]} : vector<1x8x128xf32> to vector<1x8x1xf32>
    %11 = vector.extract_strided_slice %0 {offsets = [0, 0, 0], sizes = [1, 8, 127], strides = [1, 1, 1]} : vector<1x8x128xf32> to vector<1x8x127xf32>
    %12 = tpu.concatenate %10, %11 in 2 : vector<1x8x1xf32>, vector<1x8x127xf32> -> vector<1x8x128xf32>
    %13 = arith.mulf %0, %2 : vector<1x8x128xf32>
    %14 = arith.mulf %9, %4 : vector<1x8x128xf32>
    %15 = arith.addf %13, %14 : vector<1x8x128xf32>
    %16 = arith.mulf %12, %6 : vector<1x8x128xf32>
    %17 = arith.addf %15, %16 : vector<1x8x128xf32>
    %c0_8 = arith.constant 0 : index
    %c0_9 = arith.constant 0 : index
    %c0_10 = arith.constant 0 : index
    %18 = vector.load %arg6[%c0_8, %c0_9, %c0_10] : memref<1x8x128xf32, #tpu.memory_space<vmem>>, vector<1x8x128xf32>
    tpu.vector_store %arg6[%c0_8, %c0_9, %c0_10], %17 {strides = array<i32>} : memref<1x8x128xf32, #tpu.memory_space<vmem>>, vector<1x8x128xf32>,
    return
  }
  func.func @transform_0(%arg0: i32, %arg1: i32) -> (i32, i32, i32) {
    %c0_i32 = arith.constant 0 : i32
    %c0_i32_0 = arith.constant 0 : i32
    return %arg1, %arg0, %c0_i32 : i32, i32, i32
  }
  func.func @transform_1(%arg0: i32, %arg1: i32) -> (i32, i32) {
    %c0_i32 = arith.constant 0 : i32
    %c0_i32_0 = arith.constant 0 : i32
    return %arg0, %c0_i32 : i32, i32
  }
  func.func @transform_2(%arg0: i32, %arg1: i32) -> (i32, i32) {
    %c0_i32 = arith.constant 0 : i32
    %c0_i32_0 = arith.constant 0 : i32
    return %arg0, %c0_i32 : i32, i32
  }
  func.func @transform_3(%arg0: i32, %arg1: i32) -> (i32, i32) {
    %c0_i32 = arith.constant 0 : i32
    %c0_i32_0 = arith.constant 0 : i32
    return %arg0, %c0_i32 : i32, i32
  }
  func.func @transform_4(%arg0: i32, %arg1: i32) -> (i32, i32, i32) {
    %c0_i32 = arith.constant 0 : i32
    %c0_i32_0 = arith.constant 0 : i32
    return %arg1, %arg0, %c0_i32 : i32, i32, i32
  }
}

</mosaic_0001>

<bundles_post_ra>
// kernel: tpu_custom_call.1
= control target key start
LH: loop header
LB: loop body
LE: loop exit
PB: predicated region body
PF: predicated region fallthrough
CT: control target
= control target key end

     0   :  { %9 = vsyncpa [#allocation3], 0  ;;  %s990_s0 = inlined_call_operand.hbm [shape: f32[2,8,128], index: 0, kind: input, shape index: {}]   ;;  %s991_s1 = inlined_call_operand.hbm [shape: f32[8,128], index: 1, kind: input, shape index: {}]   ;;  %s992_s2 = inlined_call_operand.hbm [shape: f32[8,128], index: 2, kind: input, shape index: {}]   ;;  %s993_s3 = inlined_call_operand.vmem [shape: f32[8,128], index: 3, kind: input, shape index: {}]   ;;  %s994_s4 = inlined_call_operand.hbm [shape: f32[2,8,128], index: 4, kind: output, shape index: {}]  }
   0x1   :  { %11 = vsyncpa [#allocation3 + $0x1], 0 }
   0x2   :  { %12 = vsyncpa [#allocation6], 0 }
   0x3   :  { %13 = vsyncpa [#allocation4], 0 }
   0x4   :  { %15 = vsyncpa [#allocation4 + $0x1], 0  ;;  %s744_s15 = smov 0   ;;  %s746_s16 = smov 0  }
   0x5   :  { %s748_s17 = smov 0   ;;  %s750_s18 = smov 0  }
   0x6   :  { %s752_s19 = smov 0   ;;  %s754_s20 = smov 0  }
   0x7 LB: > { %s436_s21 = sadd.s32 4294967295, %s711_s20   ;;  %s437_s22 = sadd.s32 4294967294, %s711_s20   ;;  %s711_s20 = sphi %s754_s20, %s21_s20   ;;  %s707_s19 = sphi %s752_s19, %s1017_s19   ;;  %s703_s18 = sphi %s750_s18, %s1016_s18   ;;  %s699_s17 = sphi %s748_s17, %s1015_s17   ;;  %s695_s16 = sphi %s746_s16, %s1014_s16   ;;  %s691_s15 = sphi %s744_s15, %s1013_s15  }
   0x8   : > { %p55_p0 = scmp.ne.s32.totalorder %s695_s16, %s691_s15  ;;  %p778_p1 = scmp.eq.s32.totalorder %s436_s21, 0 }
   0x9   : > { %p782_p2 = scmp.eq.s32.totalorder %s436_s21, 1  ;;  %p165_p3 = scmp.eq.s32.totalorder %s437_s22, 1 }
   0xa   : > { %s999_s23 = scalar_select %p778_p1, 1, 0 }
   0xb   : > { %s1000_s24 = scalar_select %p782_p2, 1, 0 }
   0xc   : > { %p788_p4 = por %p778_p1, %p55_p0  ;;  %p438_p5 = scmp.ge.s32.totalorder %s711_s20, 1 }
   0xd   : > { %p793_p6 = por %p165_p3, %p55_p0  ;;  %p172_p7 = scmp.lt.s32.totalorder %s711_s20, 3 }
   0xe   : > { %s1001_s25 = scalar_select %p788_p4, 1, 0 }
   0xf   : > { %s1002_s26 = scalar_select %p793_p6, 1, 0 }
  0x10   : > { %p798_p8 = pnand %p438_p5, %p172_p7  ;;  %s713_s28 = smov [#allocation5]  }
  0x11   : > { %s187_s29 = sshll.u32 %s713_s28, 4  ;;  %s714_s30 = smov [#allocation7]   ;;  %s188_s29 = int_to_ptr.vmem [resolvable:$true] %s187_s29 }
  0x12   : > { %s1003_s27 = scalar_select %p798_p8, 1, 0 }
  0x13   : > { %p466_p10 = pneg %p798_p8  ;;  %s200_s5 = sshll.u32 %s714_s30, 4  ;;  %s811_s5 = int_to_ptr.vmem [resolvable:$true] %s200_s5 }
  0x14   : > { %s539_s9 = scalar_lea.hbm %s991_s1, 128 }
  0x15   : > { %p807_p11 = pnand %p466_p10, %p778_p1  ;;  %p540_p12 = scmp.ne.s32.totalorder %s991_s1, %s539_s9 }
  0x16   : > { %p546_p5 = scmp.lt.u32.totalorder %s539_s9, %s991_s1 }
  0x17   : > { %p541_p13 = pneg %p807_p11 }
  0x19   : > { %p542_p0 = pnand %p541_p13, %p540_p12 }
  0x1b   : > { %p543_p3 = pneg %p542_p0 }
  0x1d   : > { %p548_p7 = pnand %p546_p5, %p543_p3 }
  0x1f   : > { %551 = shalt.err (!%p548_p7)
}
  0x20   : > { %s552_s14 = scalar_lea.vmem %s188_s29, 128  ;;  %p560_p1 = scmp.lt.s32.totalorder %s188_s29, %s188_s29 }
  0x21   : > { %p553_p10 = scmp.ne.s32.totalorder %s188_s29, %s552_s14  ;;  %p561_p4 = scmp.lt.s32.totalorder %s552_s14, %s552_s14 }
  0x23   : > { %p555_p9 = pnand %p553_p10, %p541_p13  ;;  %p562_p8 = por %p561_p4, %p560_p1 }
  0x25   : > { %p556_p6 = pneg %p555_p9 }
  0x27   : > { %p563_p2 = pnand %p562_p8, %p556_p6 }
  0x29   : > { %566 = shalt.err (!%p563_p2)
}
  0x2a   : > { %469 = dma.hbm_to_vmem [thread:$0]  (!%p807_p11), %s991_s1, 128, %s188_s29, [#allocation6]  }
  0x2b   : > { %s567_s7 = scalar_lea.hbm %s992_s2, 128 }
  0x2c   : > { %p568_p9 = scmp.ne.s32.totalorder %s992_s2, %s567_s7  ;;  %p574_p2 = scmp.lt.u32.totalorder %s567_s7, %s992_s2 }
  0x2e   : > { %p570_p1 = pnand %p568_p9, %p541_p13 }
  0x30   : > { %p571_p4 = pneg %p570_p1 }
  0x32   : > { %p576_p6 = pnand %p574_p2, %p571_p4 }
  0x34   : > { %579 = shalt.err (!%p576_p6)
}
  0x35   : > { %s580_s29 = scalar_lea.vmem %s811_s5, 128  ;;  %p588_p3 = scmp.lt.s32.totalorder %s811_s5, %s811_s5 }
  0x36   : > { %p581_p8 = scmp.ne.s32.totalorder %s811_s5, %s580_s29  ;;  %p589_p5 = scmp.lt.s32.totalorder %s580_s29, %s580_s29 }
  0x38   : > { %p583_p12 = pnand %p581_p8, %p541_p13  ;;  %p590_p7 = por %p589_p5, %p588_p3 }
  0x3a   : > { %p584_p0 = pneg %p583_p12 }
  0x3c   : > { %p591_p10 = pnand %p590_p7, %p584_p0 }
  0x3e   : > { %594 = shalt.err (!%p591_p10)
}
  0x3f   : > { %472 = dma.hbm_to_vmem [thread:$0]  (!%p807_p11), %s992_s2, 128, %s811_s5, [#allocation6]  }
  0x40   : > { %s30_s14 = sadd.s32 1, %s707_s19  ;;  %s42_s21 = sadd.s32 1, %s699_s17 }
  0x41   : > { %p31_p13 = scmp.ge.s32.totalorder %s30_s14, 2  ;;  %p49_p9 = scmp.ne.s32.totalorder %s699_s17, %s695_s16 }
  0x42   : > { %p50_p1 = scmp.eq.s32.totalorder %s711_s20, 0  ;;  %p483_p4 = scmp.lt.s32.totalorder %s711_s20, 2 }
  0x43   : > { %s1019_s14 = smov (%p31_p13, %s30_s14), 0  ;;  %p1005_p6 = scmp.ne.s32.totalorder %s1000_s24, 0 }
  0x44   : > { %p51_p2 = por %p50_p1, %p49_p9  ;;  %s37_s22 = ssub.s32 %s707_s19, %s1019_s14 }
  0x45   : > { %p870_p8 = por %p1005_p6, %p49_p9  ;;  %s218_s28 = sand.u32 1, %s699_s17  }
  0x46   : > { %p40_p12 = scmp.eq.s32.totalorder %s37_s22, 0  ;;  %s443_s5 = sshll.u32 %s218_s28, 3 }
  0x47   : > { %s444_s30 = sshll.u32 %s707_s19, 7  ;;  %s222_s24 = scalar_lea.vmem [#allocation2], %s443_s5 }
  0x48   : > { %s879_s7 = scalar_select %p40_p12, %s699_s17, %s42_s21  }
  0x49   : > { %s884_s10 = scalar_lea.hbm %s990_s0, %s444_s30  ;;  %s230_s11 = sshll.u32 %s222_s24, 4  ;;  %s892_s11 = int_to_ptr.vmem [resolvable:$true] %s230_s11 }
  0x4a   : > { %p888_p11 = pnand %p483_p4, %p51_p2  ;;  %s219_s12 = scalar_lea.sflag [#allocation3], %s218_s28 }
  0x4b   : > { %s595_s13 = scalar_lea.hbm %s884_s10, 128  ;;  %s600_s5 = scalar_lea.hbm %s990_s0, 256 }
  0x4c   : > { %p596_p0 = scmp.ne.s32.totalorder %s884_s10, %s595_s13  ;;  %p597_p3 = pneg %p888_p11 }
  0x4d   : > { %p601_p10 = scmp.lt.u32.totalorder %s884_s10, %s990_s0  ;;  %p602_p13 = scmp.lt.u32.totalorder %s600_s5, %s595_s13 }
  0x4e   : > { %p598_p5 = pnand %p597_p3, %p596_p0  ;;  %p604_p1 = scmp.lt.u32.totalorder %s595_s13, %s884_s10 }
  0x4f   : > { %p603_p9 = por %p602_p13, %p601_p10 }
  0x50   : > { %p599_p7 = pneg %p598_p5 }
  0x51   : > { %p605_p4 = por %p604_p1, %p603_p9 }
  0x53   : > { %p606_p2 = pnand %p605_p4, %p599_p7 }
  0x55   : > { %609 = shalt.err (!%p606_p2)
}
  0x56   : > { %s610_s28 = scalar_lea.vmem %s892_s11, 128  ;;  %s715_s9 = smov [#allocation2]  }
  0x57   : > { %p611_p6 = scmp.ne.s32.totalorder %s892_s11, %s610_s28  ;;  %s615_s24 = sshll.u32 %s715_s9, 4  ;;  %s616_s24 = int_to_ptr.vmem [resolvable:$false] %s615_s24 }
  0x58   : > { %s617_s21 = scalar_lea.vmem %s616_s24, 256  ;;  %p618_p5 = scmp.lt.s32.totalorder %s892_s11, %s616_s24 }
  0x59   : > { %p613_p12 = pnand %p611_p6, %p597_p3  ;;  %p619_p10 = scmp.lt.s32.totalorder %s617_s21, %s610_s28 }
  0x5b   : > { %p614_p0 = pneg %p613_p12  ;;  %p620_p13 = por %p619_p10, %p618_p5 }
  0x5d   : > { %p621_p9 = pnand %p620_p13, %p614_p0 }
  0x5f   : > { %624 = shalt.err (!%p621_p9)
}
  0x60   : > { %476 = dma.hbm_to_vmem [thread:$0]  (!%p888_p11), %s884_s10, 128, %s892_s11, %s219_s12  }
  0x61   : > { %p1008_p7 = scmp.ne.s32.totalorder %s1003_s27, 0 }
  0x62   : > { %s922_s13 = sand.u32 (!%p1008_p7), 1, %s695_s16   ;;  %p1009_p3 = scmp.ne.s32.totalorder (!%p1008_p7), %s1001_s25, 0 }
  0x63   : > { %239 = sbr.rel (%p1008_p7) target bundleno = 248 (0xf8), region = 36  ;;  %s446_s22 = sshll.u32 (!%p1008_p7), %s922_s13, 3 }
  0x64   : > { %s242_s5 = scalar_lea.sflag (!%p1008_p7), [#allocation3], %s922_s13  ;;  %s245_s30 = scalar_lea.vmem (!%p1008_p7), [#allocation2], %s446_s22 }
  0x6a   : > { %678 = dma.done.wait (%p1009_p3), %s242_s5, 128  }
  0x6b   : > { %680 = vsyncadd (%p1009_p3), %s242_s5, 4294967168  ;;  %p1010_p1 = scmp.ne.s32.totalorder %s999_s23, 0 }
  0x6d   : > { %682 = dma.done.wait (%p1010_p1), [#allocation6], 256  }
  0x6e   : > { %684 = vsyncadd (%p1010_p1), [#allocation6], 4294967040  ;;  %v286_v0 = vld [vmem:[%s245_s30] sm:$0xff]  ;;  %s716_s27 = smov 127   ;;  %s717_s10 = smov 1   ;;  %v287_v1 = vld [vmem:[#allocation5] sm:$0xff] }
  0x6f   : > { %291 = vrot.lane.b32.xlu0 %v286_v0, %s716_s27  ;;  %v288_v2 = vld [vmem:[#allocation7] sm:$0xff]  ;;  %v297_v4 = vmul.f32 %v287_v1, %v286_v0  ;;  %v289_v6 = vld [vmem:[%s993_s3] sm:$0xff]  ;;  %s451_s23 = sshll.u32 %s703_s18, 7  ;;  %s281_s29 = scalar_lea.vmem [#allocation8], %s446_s22 }
  0x70   : > { %s318_s12 = sshll.u32 %s281_s29, 4  ;;  %s941_s9 = scalar_lea.hbm %s994_s4, %s451_s23  ;;  %s943_s12 = int_to_ptr.vmem [resolvable:$true] %s318_s12 }
  0x71   : > { %s304_s24 = scalar_lea.sflag [#allocation4], %s922_s13  ;;  %s625_s21 = scalar_lea.vmem %s943_s12, 128 }
  0x72   : > { %p626_p11 = scmp.ne.s32.totalorder %s943_s12, %s625_s21  ;;  %s718_s18 = smov [#allocation8]  }
  0x73   : > { %294 = vrot.lane.b32.xlu0 %v286_v0, %s717_s10  ;;  %s629_s22 = sshll.u32 %s718_s18, 4  ;;  %s630_s22 = int_to_ptr.vmem [resolvable:$false] %s629_s22 }
  0x74   : > { %p627_p4 = pnand %p626_p11, %p870_p8  ;;  %s631_s5 = scalar_lea.vmem %s630_s22, 256 }
  0x75   : > { %p632_p6 = scmp.lt.s32.totalorder %s943_s12, %s630_s22  ;;  %p633_p12 = scmp.lt.s32.totalorder %s631_s5, %s625_s21 }
  0x76   : > { %p628_p2 = pneg %p627_p4 }
  0x77   : > { %p634_p0 = por %p633_p12, %p632_p6 }
  0x79   : > { %p635_p5 = pnand %p634_p0, %p628_p2 }
  0xe1   : > { %v292_v3 = vpop.permute.xlu0 %291 }
  0xe2   : > { %v298_v5 = vmul.f32 %v292_v3, %v288_v2 }
  0xe4   : > { %v299_v8 = vadd.f32 %v298_v5, %v297_v4 }
  0xe5   : > { %v295_v7 = vpop.permute.xlu0 %294 }
  0xe6   : > { %v300_v9 = vmul.f32 %v295_v7, %v289_v6 }
  0xe8   : > { %v301_v10 = vadd.f32 %v300_v9, %v299_v8 }
  0xea   : > { %302 = vst [vmem:[%s281_s29] sm:$0xff] %v301_v10 }
  0xeb   : > { %638 = shalt.err (!%p635_p5)
}
  0xec   : > { %s639_s13 = scalar_lea.hbm %s941_s9, 128  ;;  %s643_s10 = scalar_lea.hbm %s994_s4, 256 }
  0xed   : > { %p640_p10 = scmp.ne.s32.totalorder %s941_s9, %s639_s13  ;;  %p644_p7 = scmp.lt.u32.totalorder %s941_s9, %s994_s4 }
  0xee   : > { %p645_p3 = scmp.lt.u32.totalorder %s643_s10, %s639_s13  ;;  %p647_p11 = scmp.lt.u32.totalorder %s639_s13, %s941_s9 }
  0xef   : > { %p641_p13 = pnand %p640_p10, %p870_p8 }
  0xf0   : > { %p646_p1 = por %p645_p3, %p644_p7 }
  0xf1   : > { %p642_p9 = pneg %p641_p13 }
  0xf2   : > { %p648_p4 = por %p647_p11, %p646_p1 }
  0xf4   : > { %p649_p2 = pnand %p648_p4, %p642_p9 }
  0xf6   : > { %652 = shalt.err (!%p649_p2)
}
  0xf7   : > { %464 = dma.vmem_to_hbm [thread:$0]  (%p870_p8), %s943_s12, 128, %s941_s9, %s304_s24  }
  0xf8 PF: > { %s330_s23 = sand.u32 1, %s691_s15   ;;  %p1011_p6 = scmp.ne.s32.totalorder %s1002_s26, 0 }
  0xf9   : > { %p1012_p12 = scmp.ge.s32.totalorder %s711_s20, 2  ;;  %s331_s29 = scalar_lea.sflag [#allocation4], %s330_s23 }
  0xfb   : > { %p478_p0 = pnand %p1012_p12, %p1011_p6 }
  0xfd   : > { %686 = dma.done.wait (!%p478_p0), %s331_s29, 128  }
  0xfe   : > { %688 = vsyncadd (!%p478_p0), %s331_s29, 4294967168  ;;  %s21_s20 = sadd.s32 1, %s711_s20   ;;  %s1013_s15 = smov %s695_s16 }
  0xff   : > { %p18_p5 = scmp.ge.s32.totalorder %s21_s20, 4   ;;  %s1014_s16 = smov %s699_s17 }
 0x100   : > { %s1015_s17 = smov %s879_s7  ;;  %s1016_s18 = smov %s707_s19 }
 0x101   : > { %s1017_s19 = smov %s1019_s14  ;;  %20 = sbr.rel (!%p18_p5) target bundleno = 7 (0x7), region = 94 }
 0x108   :  { %336 = vsyncpa [#allocation3], 1 }
 0x109   :  { %338 = vsyncpa [#allocation3 + $0x1], 1 }
 0x10a   :  { %339 = vsyncpa [#allocation6], 1 }
 0x10b   :  { %340 = vsyncpa [#allocation4], 1 }
 0x10c   :  { %342 = vsyncpa [#allocation4 + $0x1], 1 }

</bundles_post_ra>
